<compile_context>
chip_gen: v7x
topology: tpu7x:2x2x1
jax: 0.10.0
libtpu: 0.0.40
codegen_flags: <defaults>
</compile_context>

<pallas_src>
import jax
import jax.numpy as jnp
from jax.experimental import pallas as pl
from jax.experimental.pallas import tpu as pltpu


def xor_mlp_kernel(params_ref, x_ref, o_ref):
    # params_ref: SMEM f32[9] = [a00, a01, c0, a10, a11, c1, m0, m1, c2] where
    #   a_jk = 0.5 * W1[j, k], c_j = 0.5 * b1[j],
    #   m_j  = 0.5 * W2[0, j], c2  = b2[0] + 0.5 * (W2[0, 0] + W2[0, 1])
    # so that  y = m0*tanh(a0.x + c0) + m1*tanh(a1.x + c1) + c2
    #            = W2 @ sigmoid(W1 @ x + b1) + b2   exactly.
    # x_ref: VMEM [2, TB] (feature-major, batch on lanes);  o_ref: VMEM [1, TB]
    x0 = x_ref[0:1, :].astype(jnp.float32)  # [1, TB]
    x1 = x_ref[1:2, :].astype(jnp.float32)  # [1, TB]

    a00 = params_ref[0]
    a01 = params_ref[1]
    c0 = params_ref[2]
    a10 = params_ref[3]
    a11 = params_ref[4]
    c1 = params_ref[5]
    m0 = params_ref[6]
    m1 = params_ref[7]
    c2 = params_ref[8]

    # linear1 (pre-scaled by 0.5): h_j = 0.5 * (x @ W1.T + b1)_j
    h0 = x0 * a00 + x1 * a01 + c0
    h1 = x0 * a10 + x1 * a11 + c1

    # sigmoid + linear2 folded: one EUP tanh per hidden unit, then 2 FMAs.
    t0 = jnp.tanh(h0)
    t1 = jnp.tanh(h1)
    y = t0 * m0 + t1 * m1 + c2

    o_ref[...] = y.astype(o_ref.dtype)


def xor_mlp(x, w1, b1, w2, b2, *, tb=32768):
    """Forward pass of XORModel.

    x:  [B, 2]  (any float dtype; kernel computes in f32)
    w1: [2, 2]  linear1.weight (PyTorch [out, in])
    b1: [2]     linear1.bias
    w2: [1, 2]  linear2.weight
    b2: [1]     linear2.bias
    returns [B, 1] in x.dtype
    """
    B = x.shape[0]
    in_dtype = x.dtype

    w1f = jnp.asarray(w1, jnp.float32)
    b1f = jnp.asarray(b1, jnp.float32)
    w2f = jnp.asarray(w2, jnp.float32).reshape(-1)
    b2f = jnp.asarray(b2, jnp.float32).reshape(-1)

    # Fold sigmoid(h) = 0.5*tanh(0.5*h) + 0.5 into the parameter table
    # (9 scalar ops once per call; saves per-element multiplies/adds).
    params = jnp.concatenate([
        jnp.stack([0.5 * w1f[0, 0], 0.5 * w1f[0, 1], 0.5 * b1f[0]]),
        jnp.stack([0.5 * w1f[1, 0], 0.5 * w1f[1, 1], 0.5 * b1f[1]]),
        jnp.stack([0.5 * w2f[0], 0.5 * w2f[1],
                   b2f[0] + 0.5 * (w2f[0] + w2f[1])]),
    ])  # f32[9] -> SMEM (pads to 64 bytes)

    # Lane-dense, feature-major layout with the batch padded to the tile size.
    b_pad = max(128, ((B + 127) // 128) * 128)
    tb_eff = min(tb, b_pad)                       # multiple of 128 by construction
    b_pad = ((b_pad + tb_eff - 1) // tb_eff) * tb_eff
    xt = jnp.zeros((2, b_pad), in_dtype).at[:, :B].set(x.T)

    grid = (b_pad // tb_eff,)

    out = pl.pallas_call(
        xor_mlp_kernel,
        out_shape=jax.ShapeDtypeStruct((1, b_pad), in_dtype),
        grid_spec=pltpu.PrefetchScalarGridSpec(
            num_scalar_prefetch=0,
            grid=grid,
            in_specs=[
                # Tiny parameter table lives in SMEM (scalar reads, no VMEM tile).
                pl.BlockSpec(memory_space=pltpu.MemorySpace.SMEM),
                # Batch-tiled, lane-dense input.
                pl.BlockSpec((2, tb_eff), lambda i: (0, i)),
            ],
            out_specs=pl.BlockSpec((1, tb_eff), lambda i: (0, i)),
        ),
        compiler_params=pltpu.CompilerParams(
            # Independent batch tiles: double-buffered DMAs; v7x can shard
            # grid steps across its 2 TensorCores.
            dimension_semantics=("parallel",),
        ),
    )(params, xt)

    return out[0, :B].reshape(B, 1)


def xor_mlp_ref(x, w1, b1, w2, b2):
    h = x @ w1.T + b1
    h = jax.nn.sigmoid(h)
    return h @ w2.T + b2


if __name__ == "__main__":
    key = jax.random.PRNGKey(0)
    k_x, k_w1, k_b1, k_w2, k_b2 = jax.random.split(key, 5)

    # Deterministic parameter init (shapes match XORModel.__init__).
    w1 = jax.random.normal(k_w1, (2, 2), jnp.float32) * 0.5   # linear1.weight [2, 2]
    b1 = jax.random.normal(k_b1, (2,), jnp.float32) * 0.5     # linear1.bias   [2]
    w2 = jax.random.normal(k_w2, (1, 2), jnp.float32) * 0.5   # linear2.weight [1, 2]
    b2 = jax.random.normal(k_b2, (1,), jnp.float32) * 0.5     # linear2.bias   [1]

    # Example inputs: batch of 8 points in {0,1}^2 (XOR-style inputs).
    x = (jax.random.uniform(k_x, (8, 2)) > 0.5).astype(jnp.float32)

    out = xor_mlp(x, w1, b1, w2, b2)
    out = jax.block_until_ready(out)

    ref = xor_mlp_ref(x, w1, b1, w2, b2)
    assert out.shape == (8, 1)
    assert jnp.allclose(out, ref, atol=1e-5, rtol=1e-5)

    print("KERNEL_OK")
</pallas_src>

<mosaic_0001>
module attributes {stable_mosaic.version = 11 : i64} {
  func.func @xor_mlp_kernel(%arg0: i32, %arg1: memref<9xf32, #tpu.memory_space<smem>>, %arg2: memref<2x128xf32, #tpu.memory_space<vmem>>, %arg3: memref<1x128xf32, #tpu.memory_space<vmem>>) attributes {dimension_semantics = [#tpu.dimension_semantics<parallel>], iteration_bounds = array<i64: 1>, scalar_prefetch = 0 : i64, scratch_operands = 0 : i64, tpu.core_type = #tpu.core_type<tc>, window_params = [{transform_indices = @transform_0, window_bounds = array<i64: 9>}, {transform_indices = @transform_1, window_bounds = array<i64: 2, 128>}, {transform_indices = @transform_2, window_bounds = array<i64: 1, 128>}]} {
    %c0 = arith.constant 0 : index
    %c0_0 = arith.constant 0 : index
    %0 = vector.load %arg2[%c0, %c0_0] : memref<2x128xf32, #tpu.memory_space<vmem>>, vector<1x128xf32>
    %c1 = arith.constant 1 : index
    %c0_1 = arith.constant 0 : index
    %1 = vector.load %arg2[%c1, %c0_1] : memref<2x128xf32, #tpu.memory_space<vmem>>, vector<1x128xf32>
    %c0_2 = arith.constant 0 : index
    %2 = memref.load %arg1[%c0_2] : memref<9xf32, #tpu.memory_space<smem>>
    %c1_3 = arith.constant 1 : index
    %3 = memref.load %arg1[%c1_3] : memref<9xf32, #tpu.memory_space<smem>>
    %c2 = arith.constant 2 : index
    %4 = memref.load %arg1[%c2] : memref<9xf32, #tpu.memory_space<smem>>
    %c3 = arith.constant 3 : index
    %5 = memref.load %arg1[%c3] : memref<9xf32, #tpu.memory_space<smem>>
    %c4 = arith.constant 4 : index
    %6 = memref.load %arg1[%c4] : memref<9xf32, #tpu.memory_space<smem>>
    %c5 = arith.constant 5 : index
    %7 = memref.load %arg1[%c5] : memref<9xf32, #tpu.memory_space<smem>>
    %c6 = arith.constant 6 : index
    %8 = memref.load %arg1[%c6] : memref<9xf32, #tpu.memory_space<smem>>
    %c7 = arith.constant 7 : index
    %9 = memref.load %arg1[%c7] : memref<9xf32, #tpu.memory_space<smem>>
    %c8 = arith.constant 8 : index
    %10 = memref.load %arg1[%c8] : memref<9xf32, #tpu.memory_space<smem>>
    %11 = vector.broadcast %2 : f32 to vector<1x128xf32>
    %12 = arith.mulf %0, %11 : vector<1x128xf32>
    %13 = vector.broadcast %3 : f32 to vector<1x128xf32>
    %14 = arith.mulf %1, %13 : vector<1x128xf32>
    %15 = arith.addf %12, %14 : vector<1x128xf32>
    %16 = vector.broadcast %4 : f32 to vector<1x128xf32>
    %17 = arith.addf %15, %16 : vector<1x128xf32>
    %18 = vector.broadcast %5 : f32 to vector<1x128xf32>
    %19 = arith.mulf %0, %18 : vector<1x128xf32>
    %20 = vector.broadcast %6 : f32 to vector<1x128xf32>
    %21 = arith.mulf %1, %20 : vector<1x128xf32>
    %22 = arith.addf %19, %21 : vector<1x128xf32>
    %23 = vector.broadcast %7 : f32 to vector<1x128xf32>
    %24 = arith.addf %22, %23 : vector<1x128xf32>
    %25 = math.tanh %17 : vector<1x128xf32>
    %26 = math.tanh %24 : vector<1x128xf32>
    %27 = vector.broadcast %8 : f32 to vector<1x128xf32>
    %28 = arith.mulf %25, %27 : vector<1x128xf32>
    %29 = vector.broadcast %9 : f32 to vector<1x128xf32>
    %30 = arith.mulf %26, %29 : vector<1x128xf32>
    %31 = arith.addf %28, %30 : vector<1x128xf32>
    %32 = vector.broadcast %10 : f32 to vector<1x128xf32>
    %33 = arith.addf %31, %32 : vector<1x128xf32>
    %c0_4 = arith.constant 0 : index
    %c0_5 = arith.constant 0 : index
    %34 = vector.load %arg3[%c0_4, %c0_5] : memref<1x128xf32, #tpu.memory_space<vmem>>, vector<1x128xf32>
    tpu.vector_store %arg3[%c0_4, %c0_5], %33 {strides = array<i32>} : memref<1x128xf32, #tpu.memory_space<vmem>>, vector<1x128xf32>,
    return
  }
  func.func @transform_0(%arg0: i32) -> i32 {
    %c0_i32 = arith.constant 0 : i32
    %c0_i32_0 = arith.constant 0 : i32
    return %c0_i32 : i32
  }
  func.func @transform_1(%arg0: i32) -> (i32, i32) {
    %c0_i32 = arith.constant 0 : i32
    %c0_i32_0 = arith.constant 0 : i32
    return %c0_i32, %arg0 : i32, i32
  }
  func.func @transform_2(%arg0: i32) -> (i32, i32) {
    %c0_i32 = arith.constant 0 : i32
    %c0_i32_0 = arith.constant 0 : i32
    return %c0_i32, %arg0 : i32, i32
  }
}

</mosaic_0001>

<bundles_post_ra>
// kernel: tpu_custom_call.1
= control target key start
LH: loop header
LB: loop body
LE: loop exit
PB: predicated region body
PF: predicated region fallthrough
CT: control target
= control target key end

     0   :  { %7 = vsyncpa [#allocation4], 0  ;;  %s170_s0 = inlined_call_operand.hbm [shape: f32[9], index: 0, kind: input, shape index: {}]   ;;  %s171_s1 = inlined_call_operand.vmem [shape: f32[2,128], index: 1, kind: input, shape index: {}]   ;;  %s172_s2 = inlined_call_operand.hbm [shape: f32[1,128], index: 2, kind: output, shape index: {}]  }
   0x1   :  { %8 = vsyncpa [#allocation3], 0  ;;  %s87_s11 = scalar_lea.hbm %s170_s0, 16 }
   0x2   :  { %p88_p0 = scmp.ne.s32.totalorder %s170_s0, %s87_s11  ;;  %p91_p1 = scmp.lt.u32.totalorder %s87_s11, %s170_s0 }
   0x4   :  { %p93_p2 = pnand %p91_p1, %p88_p0 }
   0x6   :  { %96 = shalt.err (!%p93_p2)
}
   0x7   :  { %s123_s16 = smov [#allocation2]  }
   0x8   :  { %16 = dma.hbm_to_smem %s170_s0, 16, %s123_s16, [#allocation4]  }
   0x9   :  { %119 = dma.done.wait [#allocation4], 16  }
   0xa   :  { %120 = vsyncadd [#allocation4], 4294967280 }
   0xb   :  { %22 = sfence }
   0xc   :  { %s25_s19 = sld [smem:[#allocation2]]  ;;  %s73_s20 = sld [smem:[#allocation2 + $0x1]]  ;;  %v23_v0 = vld [vmem:[%s171_s1] sm:$0x1]  ;;  %v24_v1 = vld [vmem:[%s171_s1 + $0x1] sm:$0x1] }
   0xd   :  { %s74_s21 = sld [smem:[#allocation2 + $0x2]]  ;;  %s75_s22 = sld [smem:[#allocation2 + $0x3]] }
   0xe   :  { %s76_s23 = sld [smem:[#allocation2 + $0x4]]  ;;  %s77_s24 = sld [smem:[#allocation2 + $0x5]] }
   0xf   :  { %s78_s0 = sld [smem:[#allocation2 + $0x6]]  ;;  %s79_s29 = sld [smem:[#allocation2 + $0x7]] }
  0x10   :  { %s80_s30 = sld [smem:[#allocation2 + $0x8]]  ;;  %s124_s1 = smov [#allocation5]  }
  0x11   :  { %s64_s3 = sshll.u32 %s124_s1, 4  ;;  %s65_s3 = int_to_ptr.vmem [resolvable:$true] %s64_s3 }
  0x12   :  { %v34_v2 = vstv %s25_s19  ;;  %v36_v4 = vstv %s73_s20  ;;  %s97_s4 = scalar_lea.vmem %s65_s3, 16  ;;  %s101_s5 = scalar_lea.vmem %s65_s3, 32 }
  0x13   :  { %v35_v3 = vmul.f32 %v34_v2, %v23_v0  ;;  %v37_v5 = vmul.f32 %v36_v4, %v24_v1  ;;  %v41_v6 = vstv %s75_s22  ;;  %v39_v8 = vstv %s74_s21  ;;  %p98_p3 = scmp.ne.s32.totalorder %s65_s3, %s97_s4  ;;  %p102_p4 = scmp.lt.s32.totalorder %s65_s3, %s65_s3 }
  0x14   :  { %v43_v7 = vstv %s76_s23  ;;  %v42_v9 = vmul.f32 %v41_v6, %v23_v0  ;;  %v46_v12 = vstv %s77_s24  ;;  %p103_p5 = scmp.lt.s32.totalorder %s101_s5, %s97_s4 }
  0x15   :  { %v44_v10 = vmul.f32 %v43_v7, %v24_v1  ;;  %v38_v11 = vadd.f32 %v37_v5, %v35_v3  ;;  %v50_v16 = vstv %s78_s0  ;;  %v52_v17 = vstv %s79_s29 }
  0x16   :  { %v55_v22 = vstv %s80_s30  ;;  %p104_p6 = por %p103_p5, %p102_p4 }
  0x17   :  { %v45_v13 = vadd.f32 %v44_v10, %v42_v9  ;;  %v40_v14 = vadd.f32 %v39_v8, %v38_v11 }
  0x18   :  { %p105_p7 = pnand %p104_p6, %p98_p3 }
  0x19   :  { %v47_v15 = vadd.f32 %v46_v12, %v45_v13  ;;  %83 = vtanh.f32 %v40_v14 }
  0x1b   :  { %85 = vtanh.f32 %v47_v15 }
  0x23   :  { %v84_v18 = vpop.eup %83 }
  0x24   :  { %v51_v20 = vmul.f32 %v84_v18, %v50_v16 }
  0x25   :  { %v86_v19 = vpop.eup %85 }
  0x26   :  { %v53_v21 = vmul.f32 %v86_v19, %v52_v17 }
  0x28   :  { %v54_v23 = vadd.f32 %v53_v21, %v51_v20 }
  0x2a   :  { %v56_v24 = vadd.f32 %v55_v22, %v54_v23 }
  0x2c   :  { %57 = vst [vmem:[#allocation5] sm:$0x1] %v56_v24 }
  0x2d   :  { %108 = shalt.err (!%p105_p7)
}
  0x2e   :  { %s109_s8 = scalar_lea.hbm %s172_s2, 16 }
  0x2f   :  { %p110_p8 = scmp.ne.s32.totalorder %s172_s2, %s109_s8  ;;  %p113_p9 = scmp.lt.u32.totalorder %s109_s8, %s172_s2 }
  0x31   :  { %p115_p10 = pnand %p113_p9, %p110_p8 }
  0x33   :  { %118 = shalt.err (!%p115_p10)
}
  0x34   :  { %67 = dma.vmem_to_hbm [thread:$0]  %s65_s3, 16, %s172_s2, [#allocation3]  }
  0x35   :  { %121 = dma.done.wait [#allocation3], 16  }
  0x36   :  { %122 = vsyncadd [#allocation3], 4294967280 }
  0x37   :  { %71 = vsyncpa [#allocation3], 1 }
  0x38   :  { %72 = vsyncpa [#allocation4], 1 }

</bundles_post_ra>
